<compile_context>
chip_gen: v7x
topology: tpu7x:2x2x1
jax: 0.10.0
libtpu: 0.0.40
codegen_flags: <defaults>
</compile_context>

<pallas_src>
import functools

import jax
import jax.numpy as jnp
import numpy as np
from jax import lax
from jax.experimental import pallas as pl
from jax.experimental.pallas import tpu as pltpu


def _convlstm_kernel(x_ref, h_ref, c_ref, w_ref, b_ref, m_ref,
                     h_out_ref, c_out_ref, col_ref,
                     *, input_dim, hidden_dim, kh, kw, H, W, cc_pad):
    """Processes one batch element.

    x_ref:   (1, Cin, HW)            input, spatial axis flattened onto lanes
    h_ref:   (1, hid, HW)            previous hidden state
    c_ref:   (1, hid, HW)            previous cell state
    w_ref:   (4*hid, kh*kw*cc_pad)   conv weight packed as a matmul matrix
    b_ref:   (4*hid, 1)              conv bias
    m_ref:   (kh*kw, HW)             per-tap border-validity masks (0/1, f32)
    outputs: (1, hid, HW)            h_next, c_next
    col_ref: (kh*kw*cc_pad, HW)      VMEM scratch holding the im2col operand
    """
    HW = H * W
    Cc = input_dim + hidden_dim
    ph, pw = kh // 2, kw // 2
    pad = cc_pad - Cc

    # Combined channel block, per-tap channel order [h, x, zero-pad].  Hidden
    # channels first so (hid == 8) rows land on a full sublane tile; zero pad
    # rows make every tap block exactly `cc_pad` (multiple of 8) rows so all
    # scratch stores below are tile-aligned and unmasked.
    parts = [h_ref[0].astype(jnp.float32), x_ref[0].astype(jnp.float32)]
    if pad:
        parts.append(jnp.zeros((pad, HW), jnp.float32))
    comb = jnp.concatenate(parts, axis=0)                       # (cc_pad, HW)

    # Build the (kh*kw*cc_pad, HW) im2col operand.  Tap (dy, dx) of a "same"
    # conv needs combined[:, r + dy - ph, c + dx - pw]; on the flattened
    # spatial (lane) axis that is a lane shift by s = (dy-ph)*W + (dx-pw),
    # realised as an XLU rotate plus a precomputed border mask (the mask
    # zeroes positions whose source pixel falls outside the image, which is
    # exactly the set of lanes the rotate wraps around).
    for dy in range(kh):
        for dx in range(kw):
            t = dy * kw + dx
            s = (dy - ph) * W + (dx - pw)
            row0 = t * cc_pad
            if s == 0:
                # Centre tap: identity copy, mask is all ones.
                col_ref[row0:row0 + cc_pad, :] = comb
            else:
                # jnp.roll semantics: out[:, p] = comb[:, (p + s) % HW].
                shifted = pltpu.roll(comb, shift=(-s) % HW, axis=1)
                col_ref[row0:row0 + cc_pad, :] = shifted * m_ref[t:t + 1, :]

    # Single fused MXU matmul for all taps and all four gates:
    # (4*hid, K) @ (K, HW), K = kh*kw*cc_pad.  Zero weight columns line up
    # with the zero pad rows of the scratch, so they contribute nothing.
    gates = jnp.dot(w_ref[...], col_ref[...],
                    preferred_element_type=jnp.float32)
    gates = gates + b_ref[...]                                  # (4*hid, HW)

    # LSTM gate math; PyTorch split order along channels is (i, f, o, g).
    hd = hidden_dim
    sig = jax.nn.sigmoid(gates[0:3 * hd, :])                    # one wide EUP sigmoid
    g_g = jnp.tanh(gates[3 * hd:, :])                           # one wide EUP tanh
    i_g = sig[0:hd, :]
    f_g = sig[hd:2 * hd, :]
    o_g = sig[2 * hd:3 * hd, :]

    c_cur = c_ref[0].astype(jnp.float32)                        # (hid, HW)
    c_next = f_g * c_cur + i_g * g_g
    h_next = o_g * jnp.tanh(c_next)

    # Lane-dense (last dim = H*W = 256) unmasked stores.
    h_out_ref[0] = h_next.astype(h_out_ref.dtype)
    c_out_ref[0] = c_next.astype(c_out_ref.dtype)


def convlstm_cell_forward(x_nchw, h_cur_nchw, c_cur_nchw, weight_oihw, bias_vec,
                          kernel_size):
    """Pallas ConvLSTMCell forward matching the PyTorch module.

    Args (PyTorch conventions):
      x_nchw:      (B, input_dim,  H, W)
      h_cur_nchw:  (B, hidden_dim, H, W)
      c_cur_nchw:  (B, hidden_dim, H, W)
      weight_oihw: (4*hidden_dim, input_dim+hidden_dim, kh, kw)
      bias_vec:    (4*hidden_dim,)
    Returns:
      (h_next, c_next), both NCHW (B, hidden_dim, H, W)
    """
    B, Cin, H, W = x_nchw.shape
    hid = h_cur_nchw.shape[1]
    kh, kw = kernel_size
    Cc = Cin + hid
    cc_pad = ((Cc + 7) // 8) * 8          # per-tap block, padded to sublane tile
    HW = H * W
    K = kh * kw * cc_pad

    # Free reshapes only (no transpose / concat / pad of activations in HBM).
    x2 = x_nchw.reshape(B, Cin, HW)
    h2 = h_cur_nchw.reshape(B, hid, HW)
    c2 = c_cur_nchw.reshape(B, hid, HW)

    # One-time parameter packing: OIHW -> (4*hid, kh*kw*cc_pad), contraction
    # index ordered (dy, dx, channel) with per-tap channel order [h, x, pad]
    # to match the in-kernel im2col row layout.
    w_perm = jnp.concatenate([weight_oihw[:, Cin:], weight_oihw[:, :Cin]],
                             axis=1)                              # (O, Cc, kh, kw)
    w_t = jnp.transpose(w_perm, (0, 2, 3, 1))                     # (O, kh, kw, Cc)
    w_t = jnp.pad(w_t, ((0, 0), (0, 0), (0, 0), (0, cc_pad - Cc)))
    w_mat = w_t.reshape(4 * hid, K).astype(jnp.float32)
    b_col = bias_vec.reshape(4 * hid, 1).astype(jnp.float32)

    # Static per-tap border masks (host-side numpy; constants under jit).
    ph, pw = kh // 2, kw // 2
    rows = np.arange(H)[:, None]
    cols = np.arange(W)[None, :]
    masks = []
    for dy in range(kh):
        for dx in range(kw):
            ry, cx = dy - ph, dx - pw
            m = ((rows + ry >= 0) & (rows + ry < H) &
                 (cols + cx >= 0) & (cols + cx < W))
            masks.append(m.reshape(HW))
    mask_arr = jnp.asarray(np.stack(masks).astype(np.float32))   # (kh*kw, HW)

    kernel = functools.partial(_convlstm_kernel, input_dim=Cin, hidden_dim=hid,
                               kh=kh, kw=kw, H=H, W=W, cc_pad=cc_pad)

    out_sd = jax.ShapeDtypeStruct((B, hid, HW), x_nchw.dtype)
    h2n, c2n = pl.pallas_call(
        kernel,
        out_shape=(out_sd, out_sd),
        grid_spec=pltpu.PrefetchScalarGridSpec(
            num_scalar_prefetch=0,
            grid=(B,),
            in_specs=[
                pl.BlockSpec((1, Cin, HW), lambda b: (b, 0, 0)),
                pl.BlockSpec((1, hid, HW), lambda b: (b, 0, 0)),
                pl.BlockSpec((1, hid, HW), lambda b: (b, 0, 0)),
                pl.BlockSpec((4 * hid, K), lambda b: (0, 0)),
                pl.BlockSpec((4 * hid, 1), lambda b: (0, 0)),
                pl.BlockSpec((kh * kw, HW), lambda b: (0, 0)),
            ],
            out_specs=[
                pl.BlockSpec((1, hid, HW), lambda b: (b, 0, 0)),
                pl.BlockSpec((1, hid, HW), lambda b: (b, 0, 0)),
            ],
            scratch_shapes=[pltpu.VMEM((K, HW), jnp.float32)],
        ),
        compiler_params=pltpu.CompilerParams(
            dimension_semantics=("parallel",)),
    )(x2, h2, c2, w_mat, b_col, mask_arr)

    # Free reshapes back to NCHW.
    return (h2n.reshape(B, hid, H, W), c2n.reshape(B, hid, H, W))


def _reference_forward(x, h_cur, c_cur, w_oihw, bias, kernel_size):
    """Pure-JAX reference (mirrors the PyTorch module)."""
    kh, kw = kernel_size
    combined = jnp.concatenate([x, h_cur], axis=1)                   # NCHW
    out = lax.conv_general_dilated(
        combined, w_oihw, window_strides=(1, 1),
        padding=((kh // 2, kh // 2), (kw // 2, kw // 2)),
        dimension_numbers=("NCHW", "OIHW", "NCHW"))
    out = out + bias[None, :, None, None]
    hd = h_cur.shape[1]
    cc_i, cc_f, cc_o, cc_g = (out[:, 0:hd], out[:, hd:2 * hd],
                              out[:, 2 * hd:3 * hd], out[:, 3 * hd:4 * hd])
    i = jax.nn.sigmoid(cc_i)
    f = jax.nn.sigmoid(cc_f)
    o = jax.nn.sigmoid(cc_o)
    g = jnp.tanh(cc_g)
    c_next = f * c_cur + i * g
    h_next = o * jnp.tanh(c_next)
    return h_next, c_next


if __name__ == "__main__":
    # Module config: input_size=(16,16), input_dim=4, hidden_dim=8,
    # kernel_size=(3,3), bias=True
    B, Cin, H, W = 2, 4, 16, 16
    hidden_dim = 8
    kernel_size = (3, 3)

    key = jax.random.PRNGKey(0)
    kx, kh_, kc, kw_, kb = jax.random.split(key, 5)

    x = jax.random.normal(kx, (B, Cin, H, W), dtype=jnp.float32)
    h_cur = jax.random.normal(kh_, (B, hidden_dim, H, W), dtype=jnp.float32)
    c_cur = jax.random.normal(kc, (B, hidden_dim, H, W), dtype=jnp.float32)

    # Deterministic synthetic conv parameters (shape matches nn.Conv2d in __init__)
    weight = 0.1 * jax.random.normal(
        kw_, (4 * hidden_dim, Cin + hidden_dim, *kernel_size), dtype=jnp.float32)
    bias = 0.1 * jax.random.normal(kb, (4 * hidden_dim,), dtype=jnp.float32)

    h_next, c_next = jax.jit(
        lambda *a: convlstm_cell_forward(*a, kernel_size=kernel_size)
    )(x, h_cur, c_cur, weight, bias)
    jax.block_until_ready((h_next, c_next))

    h_ref, c_ref = _reference_forward(x, h_cur, c_cur, weight, bias, kernel_size)
    np.testing.assert_allclose(np.asarray(h_next), np.asarray(h_ref),
                               rtol=1e-5, atol=1e-5)
    np.testing.assert_allclose(np.asarray(c_next), np.asarray(c_ref),
                               rtol=1e-5, atol=1e-5)

    print("KERNEL_OK")
</pallas_src>

<mosaic_0001>
module attributes {stable_mosaic.version = 11 : i64} {
  func.func @_convlstm_kernel(%arg0: i32, %arg1: memref<1x4x256xf32, #tpu.memory_space<vmem>>, %arg2: memref<1x8x256xf32, #tpu.memory_space<vmem>>, %arg3: memref<1x8x256xf32, #tpu.memory_space<vmem>>, %arg4: memref<32x144xf32, #tpu.memory_space<vmem>>, %arg5: memref<32x1xf32, #tpu.memory_space<vmem>>, %arg6: memref<9x256xf32, #tpu.memory_space<vmem>>, %arg7: memref<1x8x256xf32, #tpu.memory_space<vmem>>, %arg8: memref<1x8x256xf32, #tpu.memory_space<vmem>>, %arg9: memref<144x256xf32, #tpu.memory_space<vmem>>) attributes {dimension_semantics = [#tpu.dimension_semantics<parallel>], iteration_bounds = array<i64: 2>, scalar_prefetch = 0 : i64, scratch_operands = 1 : i64, tpu.core_type = #tpu.core_type<tc>, window_params = [{transform_indices = @transform_0, window_bounds = array<i64: 1, 4, 256>}, {transform_indices = @transform_1, window_bounds = array<i64: 1, 8, 256>}, {transform_indices = @transform_2, window_bounds = array<i64: 1, 8, 256>}, {pipeline_mode = #tpu.pipeline_mode<synchronous>, transform_indices = @transform_3, window_bounds = array<i64: 32, 144>}, {pipeline_mode = #tpu.pipeline_mode<synchronous>, transform_indices = @transform_4, window_bounds = array<i64: 32, 1>}, {pipeline_mode = #tpu.pipeline_mode<synchronous>, transform_indices = @transform_5, window_bounds = array<i64: 9, 256>}, {transform_indices = @transform_6, window_bounds = array<i64: 1, 8, 256>}, {transform_indices = @transform_7, window_bounds = array<i64: 1, 8, 256>}]} {
    %c0 = arith.constant 0 : index
    %c0_0 = arith.constant 0 : index
    %c0_1 = arith.constant 0 : index
    %0 = vector.load %arg2[%c0, %c0_0, %c0_1] : memref<1x8x256xf32, #tpu.memory_space<vmem>>, vector<1x8x256xf32>
    %1 = vector.shape_cast %0 : vector<1x8x256xf32> to vector<8x256xf32>
    %c0_2 = arith.constant 0 : index
    %c0_3 = arith.constant 0 : index
    %c0_4 = arith.constant 0 : index
    %2 = vector.load %arg1[%c0_2, %c0_3, %c0_4] : memref<1x4x256xf32, #tpu.memory_space<vmem>>, vector<1x4x256xf32>
    %3 = vector.shape_cast %2 : vector<1x4x256xf32> to vector<4x256xf32>
    %cst = arith.constant 0.000000e+00 : f32
    %4 = vector.broadcast %cst : f32 to vector<4x256xf32>
    %5 = tpu.concatenate %1, %3, %4 in 0 : vector<8x256xf32>, vector<4x256xf32>, vector<4x256xf32> -> vector<16x256xf32>
    %c17_i32 = arith.constant 17 : i32
    %6 = tpu.dynamic_rotate %5 by %c17_i32 dim 1 : vector<16x256xf32>, i32 -> vector<16x256xf32>
    %c0_5 = arith.constant 0 : index
    %c0_6 = arith.constant 0 : index
    %7 = vector.load %arg6[%c0_5, %c0_6] : memref<9x256xf32, #tpu.memory_space<vmem>>, vector<1x256xf32>
    %8 = vector.broadcast %7 : vector<1x256xf32> to vector<16x256xf32>
    %9 = arith.mulf %6, %8 : vector<16x256xf32>
    %c0_7 = arith.constant 0 : index
    %c0_8 = arith.constant 0 : index
    %10 = vector.load %arg9[%c0_7, %c0_8] : memref<144x256xf32, #tpu.memory_space<vmem>>, vector<16x256xf32>
    tpu.vector_store %arg9[%c0_7, %c0_8], %9 {strides = array<i32>} : memref<144x256xf32, #tpu.memory_space<vmem>>, vector<16x256xf32>,
    %c16_i32 = arith.constant 16 : i32
    %11 = tpu.dynamic_rotate %5 by %c16_i32 dim 1 : vector<16x256xf32>, i32 -> vector<16x256xf32>
    %c1 = arith.constant 1 : index
    %c0_9 = arith.constant 0 : index
    %12 = vector.load %arg6[%c1, %c0_9] : memref<9x256xf32, #tpu.memory_space<vmem>>, vector<1x256xf32>
    %13 = vector.broadcast %12 : vector<1x256xf32> to vector<16x256xf32>
    %14 = arith.mulf %11, %13 : vector<16x256xf32>
    %c16 = arith.constant 16 : index
    %c0_10 = arith.constant 0 : index
    %15 = vector.load %arg9[%c16, %c0_10] : memref<144x256xf32, #tpu.memory_space<vmem>>, vector<16x256xf32>
    tpu.vector_store %arg9[%c16, %c0_10], %14 {strides = array<i32>} : memref<144x256xf32, #tpu.memory_space<vmem>>, vector<16x256xf32>,
    %c15_i32 = arith.constant 15 : i32
    %16 = tpu.dynamic_rotate %5 by %c15_i32 dim 1 : vector<16x256xf32>, i32 -> vector<16x256xf32>
    %c2 = arith.constant 2 : index
    %c0_11 = arith.constant 0 : index
    %17 = vector.load %arg6[%c2, %c0_11] : memref<9x256xf32, #tpu.memory_space<vmem>>, vector<1x256xf32>
    %18 = vector.broadcast %17 : vector<1x256xf32> to vector<16x256xf32>
    %19 = arith.mulf %16, %18 : vector<16x256xf32>
    %c32 = arith.constant 32 : index
    %c0_12 = arith.constant 0 : index
    %20 = vector.load %arg9[%c32, %c0_12] : memref<144x256xf32, #tpu.memory_space<vmem>>, vector<16x256xf32>
    tpu.vector_store %arg9[%c32, %c0_12], %19 {strides = array<i32>} : memref<144x256xf32, #tpu.memory_space<vmem>>, vector<16x256xf32>,
    %c1_i32 = arith.constant 1 : i32
    %21 = tpu.dynamic_rotate %5 by %c1_i32 dim 1 : vector<16x256xf32>, i32 -> vector<16x256xf32>
    %c3 = arith.constant 3 : index
    %c0_13 = arith.constant 0 : index
    %22 = vector.load %arg6[%c3, %c0_13] : memref<9x256xf32, #tpu.memory_space<vmem>>, vector<1x256xf32>
    %23 = vector.broadcast %22 : vector<1x256xf32> to vector<16x256xf32>
    %24 = arith.mulf %21, %23 : vector<16x256xf32>
    %c48 = arith.constant 48 : index
    %c0_14 = arith.constant 0 : index
    %25 = vector.load %arg9[%c48, %c0_14] : memref<144x256xf32, #tpu.memory_space<vmem>>, vector<16x256xf32>
    tpu.vector_store %arg9[%c48, %c0_14], %24 {strides = array<i32>} : memref<144x256xf32, #tpu.memory_space<vmem>>, vector<16x256xf32>,
    %c64 = arith.constant 64 : index
    %c0_15 = arith.constant 0 : index
    %26 = vector.load %arg9[%c64, %c0_15] : memref<144x256xf32, #tpu.memory_space<vmem>>, vector<16x256xf32>
    tpu.vector_store %arg9[%c64, %c0_15], %5 {strides = array<i32>} : memref<144x256xf32, #tpu.memory_space<vmem>>, vector<16x256xf32>,
    %c255_i32 = arith.constant 255 : i32
    %27 = tpu.dynamic_rotate %5 by %c255_i32 dim 1 : vector<16x256xf32>, i32 -> vector<16x256xf32>
    %c5 = arith.constant 5 : index
    %c0_16 = arith.constant 0 : index
    %28 = vector.load %arg6[%c5, %c0_16] : memref<9x256xf32, #tpu.memory_space<vmem>>, vector<1x256xf32>
    %29 = vector.broadcast %28 : vector<1x256xf32> to vector<16x256xf32>
    %30 = arith.mulf %27, %29 : vector<16x256xf32>
    %c80 = arith.constant 80 : index
    %c0_17 = arith.constant 0 : index
    %31 = vector.load %arg9[%c80, %c0_17] : memref<144x256xf32, #tpu.memory_space<vmem>>, vector<16x256xf32>
    tpu.vector_store %arg9[%c80, %c0_17], %30 {strides = array<i32>} : memref<144x256xf32, #tpu.memory_space<vmem>>, vector<16x256xf32>,
    %c241_i32 = arith.constant 241 : i32
    %32 = tpu.dynamic_rotate %5 by %c241_i32 dim 1 : vector<16x256xf32>, i32 -> vector<16x256xf32>
    %c6 = arith.constant 6 : index
    %c0_18 = arith.constant 0 : index
    %33 = vector.load %arg6[%c6, %c0_18] : memref<9x256xf32, #tpu.memory_space<vmem>>, vector<1x256xf32>
    %34 = vector.broadcast %33 : vector<1x256xf32> to vector<16x256xf32>
    %35 = arith.mulf %32, %34 : vector<16x256xf32>
    %c96 = arith.constant 96 : index
    %c0_19 = arith.constant 0 : index
    %36 = vector.load %arg9[%c96, %c0_19] : memref<144x256xf32, #tpu.memory_space<vmem>>, vector<16x256xf32>
    tpu.vector_store %arg9[%c96, %c0_19], %35 {strides = array<i32>} : memref<144x256xf32, #tpu.memory_space<vmem>>, vector<16x256xf32>,
    %c240_i32 = arith.constant 240 : i32
    %37 = tpu.dynamic_rotate %5 by %c240_i32 dim 1 : vector<16x256xf32>, i32 -> vector<16x256xf32>
    %c7 = arith.constant 7 : index
    %c0_20 = arith.constant 0 : index
    %38 = vector.load %arg6[%c7, %c0_20] : memref<9x256xf32, #tpu.memory_space<vmem>>, vector<1x256xf32>
    %39 = vector.broadcast %38 : vector<1x256xf32> to vector<16x256xf32>
    %40 = arith.mulf %37, %39 : vector<16x256xf32>
    %c112 = arith.constant 112 : index
    %c0_21 = arith.constant 0 : index
    %41 = vector.load %arg9[%c112, %c0_21] : memref<144x256xf32, #tpu.memory_space<vmem>>, vector<16x256xf32>
    tpu.vector_store %arg9[%c112, %c0_21], %40 {strides = array<i32>} : memref<144x256xf32, #tpu.memory_space<vmem>>, vector<16x256xf32>,
    %c239_i32 = arith.constant 239 : i32
    %42 = tpu.dynamic_rotate %5 by %c239_i32 dim 1 : vector<16x256xf32>, i32 -> vector<16x256xf32>
    %c8 = arith.constant 8 : index
    %c0_22 = arith.constant 0 : index
    %43 = vector.load %arg6[%c8, %c0_22] : memref<9x256xf32, #tpu.memory_space<vmem>>, vector<1x256xf32>
    %44 = vector.broadcast %43 : vector<1x256xf32> to vector<16x256xf32>
    %45 = arith.mulf %42, %44 : vector<16x256xf32>
    %c128 = arith.constant 128 : index
    %c0_23 = arith.constant 0 : index
    %46 = vector.load %arg9[%c128, %c0_23] : memref<144x256xf32, #tpu.memory_space<vmem>>, vector<16x256xf32>
    tpu.vector_store %arg9[%c128, %c0_23], %45 {strides = array<i32>} : memref<144x256xf32, #tpu.memory_space<vmem>>, vector<16x256xf32>,
    %c0_24 = arith.constant 0 : index
    %c0_25 = arith.constant 0 : index
    %47 = vector.load %arg4[%c0_24, %c0_25] : memref<32x144xf32, #tpu.memory_space<vmem>>, vector<32x144xf32>
    %c0_26 = arith.constant 0 : index
    %c0_27 = arith.constant 0 : index
    %48 = vector.load %arg9[%c0_26, %c0_27] : memref<144x256xf32, #tpu.memory_space<vmem>>, vector<144x256xf32>
    %cst_28 = arith.constant dense<0.000000e+00> : vector<32x256xf32>
    %49 = tpu.matmul %47, %48, %cst_28 {dimension_numbers = #tpu.dot_dimension_numbers<[1], [0], [0], [1], [0, 0, 1, 1], [], []>} : vector<32x144xf32>, vector<144x256xf32>, vector<32x256xf32> -> vector<32x256xf32>
    %c0_29 = arith.constant 0 : index
    %c0_30 = arith.constant 0 : index
    %50 = vector.load %arg5[%c0_29, %c0_30] : memref<32x1xf32, #tpu.memory_space<vmem>>, vector<32x1xf32>
    %51 = vector.broadcast %50 : vector<32x1xf32> to vector<32x256xf32>
    %52 = arith.addf %49, %51 : vector<32x256xf32>
    %53 = vector.extract_strided_slice %52 {offsets = [0, 0], sizes = [24, 256], strides = [1, 1]} : vector<32x256xf32> to vector<24x256xf32>
    %54 = arith.negf %53 : vector<24x256xf32>
    %55 = math.exp %54 : vector<24x256xf32>
    %cst_31 = arith.constant 1.000000e+00 : f32
    %56 = vector.broadcast %cst_31 : f32 to vector<24x256xf32>
    %57 = arith.addf %56, %55 : vector<24x256xf32>
    %58 = arith.divf %56, %57 : vector<24x256xf32>
    %59 = vector.extract_strided_slice %52 {offsets = [24, 0], sizes = [8, 256], strides = [1, 1]} : vector<32x256xf32> to vector<8x256xf32>
    %60 = math.tanh %59 : vector<8x256xf32>
    %61 = vector.extract_strided_slice %58 {offsets = [0, 0], sizes = [8, 256], strides = [1, 1]} : vector<24x256xf32> to vector<8x256xf32>
    %62 = vector.extract_strided_slice %58 {offsets = [8, 0], sizes = [8, 256], strides = [1, 1]} : vector<24x256xf32> to vector<8x256xf32>
    %63 = vector.extract_strided_slice %58 {offsets = [16, 0], sizes = [8, 256], strides = [1, 1]} : vector<24x256xf32> to vector<8x256xf32>
    %c0_32 = arith.constant 0 : index
    %c0_33 = arith.constant 0 : index
    %c0_34 = arith.constant 0 : index
    %64 = vector.load %arg3[%c0_32, %c0_33, %c0_34] : memref<1x8x256xf32, #tpu.memory_space<vmem>>, vector<1x8x256xf32>
    %65 = vector.shape_cast %64 : vector<1x8x256xf32> to vector<8x256xf32>
    %66 = arith.mulf %62, %65 : vector<8x256xf32>
    %67 = arith.mulf %61, %60 : vector<8x256xf32>
    %68 = arith.addf %66, %67 : vector<8x256xf32>
    %69 = math.tanh %68 : vector<8x256xf32>
    %70 = arith.mulf %63, %69 : vector<8x256xf32>
    %c0_35 = arith.constant 0 : index
    %c0_36 = arith.constant 0 : index
    %c0_37 = arith.constant 0 : index
    %71 = vector.load %arg7[%c0_35, %c0_36, %c0_37] : memref<1x8x256xf32, #tpu.memory_space<vmem>>, vector<1x8x256xf32>
    %72 = vector.shape_cast %71 : vector<1x8x256xf32> to vector<8x256xf32>
    %73 = vector.shape_cast %70 : vector<8x256xf32> to vector<1x8x256xf32>
    tpu.vector_store %arg7[%c0_35, %c0_36, %c0_37], %73 {strides = array<i32>} : memref<1x8x256xf32, #tpu.memory_space<vmem>>, vector<1x8x256xf32>,
    %c0_38 = arith.constant 0 : index
    %c0_39 = arith.constant 0 : index
    %c0_40 = arith.constant 0 : index
    %74 = vector.load %arg8[%c0_38, %c0_39, %c0_40] : memref<1x8x256xf32, #tpu.memory_space<vmem>>, vector<1x8x256xf32>
    %75 = vector.shape_cast %74 : vector<1x8x256xf32> to vector<8x256xf32>
    %76 = vector.shape_cast %68 : vector<8x256xf32> to vector<1x8x256xf32>
    tpu.vector_store %arg8[%c0_38, %c0_39, %c0_40], %76 {strides = array<i32>} : memref<1x8x256xf32, #tpu.memory_space<vmem>>, vector<1x8x256xf32>,
    return
  }
  func.func @transform_0(%arg0: i32) -> (i32, i32, i32) {
    %c0_i32 = arith.constant 0 : i32
    %c0_i32_0 = arith.constant 0 : i32
    %c0_i32_1 = arith.constant 0 : i32
    return %arg0, %c0_i32, %c0_i32_0 : i32, i32, i32
  }
  func.func @transform_1(%arg0: i32) -> (i32, i32, i32) {
    %c0_i32 = arith.constant 0 : i32
    %c0_i32_0 = arith.constant 0 : i32
    %c0_i32_1 = arith.constant 0 : i32
    return %arg0, %c0_i32, %c0_i32_0 : i32, i32, i32
  }
  func.func @transform_2(%arg0: i32) -> (i32, i32, i32) {
    %c0_i32 = arith.constant 0 : i32
    %c0_i32_0 = arith.constant 0 : i32
    %c0_i32_1 = arith.constant 0 : i32
    return %arg0, %c0_i32, %c0_i32_0 : i32, i32, i32
  }
  func.func @transform_3(%arg0: i32) -> (i32, i32) {
    %c0_i32 = arith.constant 0 : i32
    %c0_i32_0 = arith.constant 0 : i32
    %c0_i32_1 = arith.constant 0 : i32
    return %c0_i32, %c0_i32_0 : i32, i32
  }
  func.func @transform_4(%arg0: i32) -> (i32, i32) {
    %c0_i32 = arith.constant 0 : i32
    %c0_i32_0 = arith.constant 0 : i32
    %c0_i32_1 = arith.constant 0 : i32
    return %c0_i32, %c0_i32_0 : i32, i32
  }
  func.func @transform_5(%arg0: i32) -> (i32, i32) {
    %c0_i32 = arith.constant 0 : i32
    %c0_i32_0 = arith.constant 0 : i32
    %c0_i32_1 = arith.constant 0 : i32
    return %c0_i32, %c0_i32_0 : i32, i32
  }
  func.func @transform_6(%arg0: i32) -> (i32, i32, i32) {
    %c0_i32 = arith.constant 0 : i32
    %c0_i32_0 = arith.constant 0 : i32
    %c0_i32_1 = arith.constant 0 : i32
    return %arg0, %c0_i32, %c0_i32_0 : i32, i32, i32
  }
  func.func @transform_7(%arg0: i32) -> (i32, i32, i32) {
    %c0_i32 = arith.constant 0 : i32
    %c0_i32_0 = arith.constant 0 : i32
    %c0_i32_1 = arith.constant 0 : i32
    return %arg0, %c0_i32, %c0_i32_0 : i32, i32, i32
  }
}

</mosaic_0001>

<bundles_post_ra>
// kernel: _lambda_.1
= control target key start
LH: loop header
LB: loop body
LE: loop exit
PB: predicated region body
PF: predicated region fallthrough
CT: control target
= control target key end

     0   :  { %s1162_s24 = smov 0   ;;  %s1319_s0 = inlined_call_operand.vmem [shape: f32[2,4,256], index: 0, kind: input, shape index: {}]   ;;  %s1320_s1 = inlined_call_operand.vmem [shape: f32[2,8,256], index: 1, kind: input, shape index: {}]   ;;  %s1321_s2 = inlined_call_operand.vmem [shape: f32[2,8,256], index: 2, kind: input, shape index: {}]   ;;  %s1322_s3 = inlined_call_operand.vmem [shape: f32[32,144], index: 3, kind: input, shape index: {}]   ;;  %s1323_s4 = inlined_call_operand.vmem [shape: f32[32,1], index: 4, kind: input, shape index: {}]   ;;  %s1324_s5 = inlined_call_operand.vmem [shape: f32[9,256], index: 5, kind: input, shape index: {}]   ;;  %s1325_s6 = inlined_call_operand.vmem [shape: f32[2,8,256], index: 6, kind: output, shape index: {0}]   ;;  %s1326_s7 = inlined_call_operand.vmem [shape: f32[2,8,256], index: 7, kind: output, shape index: {1}]  }
   0x1 LB: > { %s954_s25 = sadd.s32 4294967295, %s1110_s24   ;;  %p958_p0 = scmp.ge.s32.totalorder %s1110_s24, 1  ;;  %s1110_s24 = sphi %s1162_s24, %s18_s24  }
   0x2   : > { %p260_p1 = scmp.lt.s32.totalorder %s1110_s24, 3 }
   0x4   : > { %p261_p2 = pnand %p958_p0, %p260_p1 }
   0x5   : > { %p307_p3 = scmp.lt.s32.totalorder (!%p261_p2), %s954_s25, 1  ;;  %vm338_vm0 = vcmask (!%p261_p2), 1043456   ;;  %s1112_s11 = smov (!%p261_p2), 17   ;;  %v619_v8 = vld [vmem:[%s1322_s3 + $0x8] sm:$0xff] (!%p261_p2)  ;;  %vm686_vm1 = vcmask (!%p261_p2), 130048   ;;  %v1120_v10 = vmov (!%p261_p2), 0   ;;  %v349_v15 = vlaneseq (!%p261_p2) }
   0x6   : > { %264 = sbr.rel (%p261_p2) target bundleno = 464 (0x1d0), region = 44  ;;  %s1113_s12 = smov (!%p261_p2), 16   ;;  %v623_v9 = vld [vmem:[%s1322_s3 + $0x28] sm:$0xff] (!%p261_p2)  ;;  %976 = vmatprep.mubr.msk.f32.mxu0 (!%p261_p2), %vm686_vm1, %v619_v8  ;;  %1069 = vset.pattern.permute.xlu0 (!%p261_p2), %v1120_v10  ;;  %v662_v11 = vld [vmem:[%s1323_s4] sm:$0xff] (!%p261_p2)  ;;  %v665_v13 = vld [vmem:[%s1323_s4 + $0x18] sm:$0xff] (!%p261_p2)  ;;  %vm1121_vm6 = vmmov (!%p261_p2), 1  }
   0x7   : > { %s1114_s13 = smov (!%p261_p2), 15   ;;  %s1115_s14 = smov (!%p261_p2), 1   ;;  %978 = vmatprep.mubr.msk.f32.mxu1 (!%p261_p2), %vm686_vm1, %v623_v9  ;;  %1070 = vset.pattern.permute.xlu1 (!%p261_p2), %v1120_v10  ;;  %v663_v12 = vld [vmem:[%s1323_s4 + $0x8] sm:$0xff] (!%p261_p2)  ;;  %v664_v14 = vld [vmem:[%s1323_s4 + $0x10] sm:$0xff] (!%p261_p2)  ;;  %v359_v16 = vshrl.u32 (!%p261_p2), %v349_v15, 7  ;;  %v1205_v18 = vand.u32 (!%p261_p2), 127, %v349_v15  ;;  %vm1247_vm7 = vmpackc.low (!%p261_p2), %vm338_vm0, %vm1121_vm6 }
   0x8   : > { %s1116_s15 = smov (!%p261_p2), 127   ;;  %s1117_s16 = smov (!%p261_p2), 113   ;;  %v356_v22 = vld [vmem:[%s1324_s5] ss:$8 sm:$0x3] (!%p261_p2) }
   0x9   : > { %s1118_s17 = smov (!%p261_p2), 112   ;;  %s1119_s22 = smov (!%p261_p2), 111   ;;  %v1207_v20 = vsub.s32 (!%p261_p2), 0, %v359_v16  ;;  %v1209_v21 = vsub.s32 (!%p261_p2), 1, %v359_v16  ;;  %vm351_vm2 = vcmp.lt.s32.totalorder (!%p261_p2), %v1205_v18, 17  ;;  %vm384_vm3 = vcmp.lt.s32.totalorder (!%p261_p2), %v1205_v18, 16 }
   0xa   : > { %v969_v27 = vld [vmem:[%s1324_s5 + $0x1] ss:$8 sm:$0x3] (!%p261_p2)  ;;  %v970_v52 = vld [vmem:[%s1324_s5 + $0x2] ss:$8 sm:$0x3] (!%p261_p2) }
   0xb   : > { %v361_v25 = vrot.slane (!%p261_p2), %v356_v22, %v1207_v20  ;;  %v365_v26 = vrot.slane (!%p261_p2), %v356_v22, %v1209_v21  ;;  %v395_v34 = vrot.slane (!%p261_p2), %v969_v27, %v1207_v20  ;;  %v399_v35 = vrot.slane (!%p261_p2), %v969_v27, %v1209_v21  ;;  %v972_v27 = vld [vmem:[%s1324_s5 + $0x5] ss:$8 sm:$0x3] (!%p261_p2) }
   0xc   : > { %vm418_vm4 = vcmp.lt.s32.totalorder (!%p261_p2), %v1205_v18, 15  ;;  %v429_v57 = vrot.slane (!%p261_p2), %v970_v52, %v1207_v20  ;;  %v433_v58 = vrot.slane (!%p261_p2), %v970_v52, %v1209_v21  ;;  %vm452_vm5 = vcmp.lt.s32.totalorder (!%p261_p2), %v1205_v18, 1 }
   0xd   : > { %s1330_s25 = smov (!%p307_p3, %s954_s25), 1  ;;  %vm490_vm8 = vcmp.lt.s32.totalorder %v1205_v18, 127  ;;  %vm524_vm9 = vcmp.lt.s32.totalorder %v1205_v18, 113  ;;  %vm558_vm10 = vcmp.lt.s32.totalorder %v1205_v18, 112  ;;  %vm592_vm11 = vcmp.lt.s32.totalorder %v1205_v18, 111  ;;  %v618_v18 = vld [vmem:[%s1322_s3] sm:$0xff] }
   0xe   : > { %s1170_s26 = sshll.u32 %s1330_s25, 4  ;;  %s988_s27 = sshll.u32 %s1330_s25, 3 }
   0xf   : > { %s316_s30 = scalar_lea.vmem %s1320_s1, %s1170_s26  ;;  %s311_s10 = scalar_lea.vmem %s1319_s0, %s988_s27 }
  0x10   : > { %v333_v0 = vld [vmem:[%s316_s30 + $0x8] sm:$0xff]  ;;  %v332_v1 = vld [vmem:[%s316_s30] sm:$0xff]  ;;  %s321_s19 = scalar_lea.vmem %s1321_s2, %s1170_s26  ;;  %s326_s27 = scalar_lea.vmem %s1325_s6, %s1170_s26 }
  0x11   : > { %v334_v2 = vld [vmem:[%s311_s10] sm:$0xff]  ;;  %345 = vrot.lane.b32.xlu1 %v333_v0, %s1112_s11  ;;  %341 = vrot.lane.b32.xlu0 %v332_v1, %s1112_s11 }
  0x12   : > { %v339_v3 = vsel %vm338_vm0, %v334_v2, 0.0  ;;  %v336_v4 = vcombine.high %v334_v2, %v334_v2  ;;  %v1183_v7 = vpack.c.bf16 %v334_v2, %v332_v1 }
  0x14   : > { %v340_v5 = vsel %vm338_vm0, %v336_v4, 0.0  ;;  %v1181_v6 = vpack.c.bf16 %v336_v4, %v333_v0 }
  0x15   : > { %376 = vrot.lane.b32.xlu0 %v332_v1, %s1113_s12  ;;  %378 = vrot.lane.b32.xlu1 %v339_v3, %s1113_s12 }
  0x19   : > { %343 = vrot.lane.b32.xlu0 %v339_v3, %s1112_s11  ;;  %347 = vrot.lane.b32.xlu1 %v340_v5, %s1112_s11 }
  0x1d   : > { %380 = vrot.lane.b32.xlu0 %v333_v0, %s1113_s12  ;;  %382 = vrot.lane.b32.xlu1 %v340_v5, %s1113_s12 }
  0x21   : > { %410 = vrot.lane.b32.xlu0 %v332_v1, %s1114_s13  ;;  %412 = vrot.lane.b32.xlu1 %v339_v3, %s1114_s13 }
  0x25   : > { %414 = vrot.lane.b32.xlu0 %v333_v0, %s1114_s13  ;;  %416 = vrot.lane.b32.xlu1 %v340_v5, %s1114_s13 }
  0x29   : > { %444 = vrot.lane.b32.xlu0 %v332_v1, %s1115_s14  ;;  %446 = vrot.lane.b32.xlu1 %v339_v3, %s1115_s14 }
  0x2d   : > { %448 = vrot.lane.b32.xlu0 %v333_v0, %s1115_s14  ;;  %450 = vrot.lane.b32.xlu1 %v340_v5, %s1115_s14 }
  0x31   : > { %482 = vrot.lane.b32.xlu0 %v332_v1, %s1116_s15  ;;  %484 = vrot.lane.b32.xlu1 %v339_v3, %s1116_s15 }
  0x35   : > { %486 = vrot.lane.b32.xlu0 %v333_v0, %s1116_s15  ;;  %488 = vrot.lane.b32.xlu1 %v340_v5, %s1116_s15 }
  0x39   : > { %516 = vrot.lane.b32.xlu0 %v332_v1, %s1117_s16  ;;  %518 = vrot.lane.b32.xlu1 %v339_v3, %s1117_s16 }
  0x3d   : > { %520 = vrot.lane.b32.xlu0 %v333_v0, %s1117_s16  ;;  %522 = vrot.lane.b32.xlu1 %v340_v5, %s1117_s16 }
  0x41   : > { %550 = vrot.lane.b32.xlu0 %v332_v1, %s1118_s17  ;;  %552 = vrot.lane.b32.xlu1 %v339_v3, %s1118_s17 }
  0x45   : > { %554 = vrot.lane.b32.xlu0 %v333_v0, %s1118_s17  ;;  %556 = vrot.lane.b32.xlu1 %v340_v5, %s1118_s17 }
  0x49   : > { %584 = vrot.lane.b32.xlu0 %v332_v1, %s1119_s22  ;;  %586 = vrot.lane.b32.xlu1 %v339_v3, %s1119_s22 }
  0x4d   : > { %588 = vrot.lane.b32.xlu0 %v333_v0, %s1119_s22  ;;  %590 = vrot.lane.b32.xlu1 %v340_v5, %s1119_s22  ;;  %v971_v5 = vld [vmem:[%s1324_s5 + $0x3] ss:$8 sm:$0x3]  ;;  %s331_s22 = scalar_lea.vmem %s1326_s7, %s1170_s26 }
  0x51   : > { %668 = vperm.xlu0 %1069, %v662_v11   ;;  %673 = vperm.xlu1 %1070, %v663_v12   ;;  %v463_v12 = vrot.slane %v971_v5, %v1207_v20 }
  0x55   : > { %683 = vperm.xlu0 %1069, %v665_v13   ;;  %678 = vperm.xlu1 %1070, %v664_v14   ;;  %v467_v13 = vrot.slane %v971_v5, %v1209_v21 }
  0x83   : > { %v346_v17 = vpop.permute.xlu1 %345  ;;  %v342_v19 = vpop.permute.xlu0 %341 }
  0x84   : > { %v352_v28 = vsel %vm351_vm2, %v342_v19, %v346_v17  ;;  %v354_v29 = vsel %vm351_vm2, %v346_v17, %v342_v19 }
  0x85   : > { %v368_v36 = vmul.f32 %v361_v25, %v354_v29  ;;  %v369_v37 = vmul.f32 %v365_v26, %v352_v28 }
  0x87   : > { %v377_v23 = vpop.permute.xlu0 %376  ;;  %v379_v24 = vpop.permute.xlu1 %378 }
  0x8b   : > { %v344_v30 = vpop.permute.xlu0 %343  ;;  %v348_v31 = vpop.permute.xlu1 %347 }
  0x8c   : > { %v353_v32 = vsel %vm351_vm2, %v344_v30, %v348_v31  ;;  %v355_v33 = vsel %vm351_vm2, %v348_v31, %v344_v30 }
  0x8d   : > { %v370_v38 = vmul.f32 %v361_v25, %v355_v33  ;;  %v371_v39 = vmul.f32 %v365_v26, %v353_v32  ;;  %v501_v33 = vrot.slane %v972_v27, %v1207_v20 }
  0x8f   : > { %v381_v40 = vpop.permute.xlu0 %380  ;;  %v383_v41 = vpop.permute.xlu1 %382  ;;  %v995_v42 = vpack.c.bf16 %v371_v39, %v369_v37  ;;  %v997_v43 = vpack.c.bf16 %v370_v38, %v368_v36 }
  0x90   : > { %v385_v44 = vsel %vm384_vm3, %v377_v23, %v381_v40  ;;  %v387_v45 = vsel %vm384_vm3, %v381_v40, %v377_v23  ;;  %v386_v46 = vsel %vm384_vm3, %v379_v24, %v383_v41  ;;  %v388_v47 = vsel %vm384_vm3, %v383_v41, %v379_v24 }
  0x91   : > { %v402_v48 = vmul.f32 %v395_v34, %v387_v45  ;;  %v403_v49 = vmul.f32 %v399_v35, %v385_v44  ;;  %v404_v50 = vmul.f32 %v395_v34, %v388_v47  ;;  %v405_v51 = vmul.f32 %v399_v35, %v386_v46  ;;  %996 = vmatprep.subr.bf16.mxu0 %v995_v42 }
  0x92   : > { %1033 = vmatprep.subr.bf16.mxu1 %v995_v42  ;;  %998 = vmatpush1.bf16.msra.mxu0 %v997_v43  ;;  %v505_v34 = vrot.slane %v972_v27, %v1209_v21 }
  0x93   : > { %1042 = vmatpush1.bf16.msra.mxu1 %v997_v43  ;;  %v411_v53 = vpop.permute.xlu0 %410  ;;  %v413_v54 = vpop.permute.xlu1 %412  ;;  %v999_v55 = vpack.c.bf16 %v405_v51, %v403_v49  ;;  %v1001_v56 = vpack.c.bf16 %v404_v50, %v402_v48 }
  0x95   : > { %1000 = vmatprep.subr.bf16.mxu0 %v999_v55  ;;  %1034 = vmatprep.subr.bf16.mxu1 %v999_v55 }
  0x96   : > { %1002 = vmatpush1.bf16.msra.mxu0 %v1001_v56 }
  0x97   : > { %1043 = vmatpush1.bf16.msra.mxu1 %v1001_v56  ;;  %v415_v59 = vpop.permute.xlu0 %414  ;;  %v417_v60 = vpop.permute.xlu1 %416 }
  0x98   : > { %v419_v61 = vsel %vm418_vm4, %v411_v53, %v415_v59  ;;  %v421_v62 = vsel %vm418_vm4, %v415_v59, %v411_v53  ;;  %v420_v63 = vsel %vm418_vm4, %v413_v54, %v417_v60  ;;  %v422_v0 = vsel %vm418_vm4, %v417_v60, %v413_v54  ;;  %v974_v60 = vld [vmem:[%s1324_s5 + $0x7] ss:$8 sm:$0x3] }
  0x99   : > { %v436_v1 = vmul.f32 %v429_v57, %v421_v62  ;;  %v437_v2 = vmul.f32 %v433_v58, %v419_v61  ;;  %v438_v3 = vmul.f32 %v429_v57, %v422_v0  ;;  %v439_v4 = vmul.f32 %v433_v58, %v420_v63 }
  0x9b   : > { %v445_v8 = vpop.permute.xlu0 %444  ;;  %v447_v9 = vpop.permute.xlu1 %446  ;;  %v1003_v10 = vpack.c.bf16 %v439_v4, %v437_v2  ;;  %v1005_v11 = vpack.c.bf16 %v438_v3, %v436_v1  ;;  %v569_v1 = vrot.slane %v974_v60, %v1207_v20  ;;  %v573_v2 = vrot.slane %v974_v60, %v1209_v21 }
  0x9d   : > { %1004 = vmatprep.subr.bf16.mxu0 %v1003_v10  ;;  %1035 = vmatprep.subr.bf16.mxu1 %v1003_v10 }
  0x9e   : > { %1006 = vmatpush1.bf16.msra.mxu0 %v1005_v11  ;;  %1044 = vmatpush1.bf16.msra.mxu1 %v1005_v11 }
  0x9f   : > { %v449_v14 = vpop.permute.xlu0 %448  ;;  %v451_v15 = vpop.permute.xlu1 %450 }
  0xa0   : > { %v453_v16 = vsel %vm452_vm5, %v445_v8, %v449_v14  ;;  %v455_v17 = vsel %vm452_vm5, %v449_v14, %v445_v8  ;;  %v454_v19 = vsel %vm452_vm5, %v447_v9, %v451_v15  ;;  %v456_v22 = vsel %vm452_vm5, %v451_v15, %v447_v9  ;;  %v975_v15 = vld [vmem:[%s1324_s5 + $0x10] ss:$8 sm:$0x3] }
  0xa1   : > { %v470_v23 = vmul.f32 %v463_v12, %v455_v17  ;;  %v471_v24 = vmul.f32 %v467_v13, %v453_v16  ;;  %v472_v25 = vmul.f32 %v463_v12, %v456_v22  ;;  %v473_v26 = vmul.f32 %v467_v13, %v454_v19 }
  0xa3   : > { %v483_v28 = vpop.permute.xlu0 %482  ;;  %v485_v29 = vpop.permute.xlu1 %484  ;;  %v1007_v30 = vpack.c.bf16 %v473_v26, %v471_v24  ;;  %v1009_v31 = vpack.c.bf16 %v472_v25, %v470_v23  ;;  %v603_v23 = vrot.slane %v975_v15, %v1207_v20  ;;  %v607_v24 = vrot.slane %v975_v15, %v1209_v21 }
  0xa5   : > { %1008 = vmatprep.subr.bf16.mxu0 %v1007_v30  ;;  %1036 = vmatprep.subr.bf16.mxu1 %v1007_v30 }
  0xa6   : > { %1010 = vmatpush1.bf16.msra.mxu0 %v1009_v31  ;;  %1045 = vmatpush1.bf16.msra.mxu1 %v1009_v31 }
  0xa7   : > { %v487_v35 = vpop.permute.xlu0 %486  ;;  %v489_v36 = vpop.permute.xlu1 %488  ;;  %1013 = vmatprep.subr.msk.bf16.mxu0 %vm1247_vm7, %v1181_v6  ;;  %1037 = vmatprep.subr.msk.bf16.mxu1 %vm1247_vm7, %v1181_v6  ;;  %v973_v6 = vld [vmem:[%s1324_s5 + $0x6] ss:$8 sm:$0x3] }
  0xa8   : > { %v491_v37 = vsel %vm490_vm8, %v483_v28, %v487_v35  ;;  %v493_v38 = vsel %vm490_vm8, %v487_v35, %v483_v28  ;;  %v492_v39 = vsel %vm490_vm8, %v485_v29, %v489_v36  ;;  %v494_v40 = vsel %vm490_vm8, %v489_v36, %v485_v29 }
  0xa9   : > { %v508_v41 = vmul.f32 %v501_v33, %v491_v37  ;;  %v509_v42 = vmul.f32 %v505_v34, %v493_v38  ;;  %v510_v43 = vmul.f32 %v501_v33, %v492_v39  ;;  %v511_v44 = vmul.f32 %v505_v34, %v494_v40  ;;  %v625_v37 = vld [vmem:[%s1322_s3 + $0x38] sm:$0xff]  ;;  %v620_v38 = vld [vmem:[%s1322_s3 + $0x10] sm:$0xff] }
  0xaa   : > { %1016 = vmatpush1.bf16.msk.msra.mxu0 %vm1247_vm7, %v1183_v7  ;;  %1046 = vmatpush1.bf16.msk.msra.mxu1 %vm1247_vm7, %v1183_v7  ;;  %v535_v49 = vrot.slane %v973_v6, %v1207_v20  ;;  %v539_v50 = vrot.slane %v973_v6, %v1209_v21  ;;  %v622_v20 = vld [vmem:[%s1322_s3 + $0x20] sm:$0xff]  ;;  %v621_v21 = vld [vmem:[%s1322_s3 + $0x18] sm:$0xff]  ;;  %v624_v39 = vld [vmem:[%s1322_s3 + $0x30] sm:$0xff] }
  0xab   : > { %v517_v45 = vpop.permute.xlu0 %516  ;;  %v519_v46 = vpop.permute.xlu1 %518  ;;  %v1017_v47 = vpack.c.bf16 %v511_v44, %v509_v42  ;;  %v1019_v48 = vpack.c.bf16 %v510_v43, %v508_v41 }
  0xad   : > { %1018 = vmatprep.subr.bf16.mxu0 %v1017_v47  ;;  %1038 = vmatprep.subr.bf16.mxu1 %v1017_v47 }
  0xae   : > { %1020 = vmatpush1.bf16.msra.mxu0 %v1019_v48  ;;  %1047 = vmatpush1.bf16.msra.mxu1 %v1019_v48 }
  0xaf   : > { %v521_v51 = vpop.permute.xlu0 %520  ;;  %v523_v7 = vpop.permute.xlu1 %522 }
  0xb0   : > { %v525_v52 = vsel %vm524_vm9, %v517_v45, %v521_v51  ;;  %v527_v53 = vsel %vm524_vm9, %v521_v51, %v517_v45  ;;  %v526_v54 = vsel %vm524_vm9, %v519_v46, %v523_v7  ;;  %v528_v55 = vsel %vm524_vm9, %v523_v7, %v519_v46 }
  0xb1   : > { %v542_v56 = vmul.f32 %v535_v49, %v525_v52  ;;  %v543_v57 = vmul.f32 %v539_v50, %v527_v53  ;;  %v544_v58 = vmul.f32 %v535_v49, %v526_v54  ;;  %v545_v59 = vmul.f32 %v539_v50, %v528_v55 }
  0xb3   : > { %v551_v61 = vpop.permute.xlu0 %550  ;;  %v553_v62 = vpop.permute.xlu1 %552  ;;  %v1021_v63 = vpack.c.bf16 %v545_v59, %v543_v57  ;;  %v1023_v0 = vpack.c.bf16 %v544_v58, %v542_v56 }
  0xb5   : > { %1022 = vmatprep.subr.bf16.mxu0 %v1021_v63  ;;  %1039 = vmatprep.subr.bf16.mxu1 %v1021_v63 }
  0xb6   : > { %1024 = vmatpush1.bf16.msra.mxu0 %v1023_v0  ;;  %1048 = vmatpush1.bf16.msra.mxu1 %v1023_v0 }
  0xb7   : > { %v555_v3 = vpop.permute.xlu0 %554  ;;  %v557_v4 = vpop.permute.xlu1 %556 }
  0xb8   : > { %v559_v5 = vsel %vm558_vm10, %v551_v61, %v555_v3  ;;  %v561_v8 = vsel %vm558_vm10, %v555_v3, %v551_v61  ;;  %v560_v9 = vsel %vm558_vm10, %v553_v62, %v557_v4  ;;  %v562_v10 = vsel %vm558_vm10, %v557_v4, %v553_v62 }
  0xb9   : > { %v576_v11 = vmul.f32 %v569_v1, %v559_v5  ;;  %v577_v12 = vmul.f32 %v573_v2, %v561_v8  ;;  %v578_v13 = vmul.f32 %v569_v1, %v560_v9  ;;  %v579_v14 = vmul.f32 %v573_v2, %v562_v10 }
  0xbb   : > { %v585_v16 = vpop.permute.xlu0 %584  ;;  %v587_v17 = vpop.permute.xlu1 %586  ;;  %v1025_v19 = vpack.c.bf16 %v579_v14, %v577_v12  ;;  %v1027_v22 = vpack.c.bf16 %v578_v13, %v576_v11 }
  0xbd   : > { %1026 = vmatprep.subr.bf16.mxu0 %v1025_v19  ;;  %1040 = vmatprep.subr.bf16.mxu1 %v1025_v19 }
  0xbe   : > { %1028 = vmatpush1.bf16.msra.mxu0 %v1027_v22  ;;  %1049 = vmatpush1.bf16.msra.mxu1 %v1027_v22  ;;  %v827_v22 = vld [vmem:[%s321_s19 + $0x8] sm:$0xff] }
  0xbf   : > { %v589_v25 = vpop.permute.xlu0 %588  ;;  %v591_v26 = vpop.permute.xlu1 %590 }
  0xc0   : > { %v593_v27 = vsel %vm592_vm11, %v585_v16, %v589_v25  ;;  %v595_v28 = vsel %vm592_vm11, %v589_v25, %v585_v16  ;;  %v594_v29 = vsel %vm592_vm11, %v587_v17, %v591_v26  ;;  %v596_v30 = vsel %vm592_vm11, %v591_v26, %v587_v17  ;;  %v826_v17 = vld [vmem:[%s321_s19] sm:$0xff] }
  0xc1   : > { %v610_v31 = vmul.f32 %v603_v23, %v593_v27  ;;  %v611_v32 = vmul.f32 %v607_v24, %v595_v28  ;;  %v612_v33 = vmul.f32 %v603_v23, %v594_v29  ;;  %v613_v34 = vmul.f32 %v607_v24, %v596_v30 }
  0xc3   : > { %v1029_v35 = vpack.c.bf16 %v613_v34, %v611_v32  ;;  %v1031_v36 = vpack.c.bf16 %v612_v33, %v610_v31 }
  0xc5   : > { %1030 = vmatprep.subr.bf16.mxu0 %v1029_v35  ;;  %1041 = vmatprep.subr.bf16.mxu1 %v1029_v35 }
  0xc6   : > { %1032 = vmatpush1.bf16.msra.mxu0 %v1031_v36  ;;  %1050 = vmatpush1.bf16.msra.mxu1 %v1031_v36 }
  0xc9   : > { %764 = vmatmul.mubr.f32.vlgmr.msra.gmra.mrb[0].mxu0 %v618_v18  ;;  %776 = vmatmul.mubr.f32.vlgmr.msra.gmra.mrb[0].mxu1 %v622_v20 }
  0xca   : > { %977 = vmatprep.mubr.msk.f32.mxu0 %vm686_vm1, %v621_v21  ;;  %979 = vmatprep.mubr.msk.f32.mxu1 %vm686_vm1, %v625_v37 }
  0xcd   : > { %770 = vmatmul.mubr.f32.gmra.mrb[2].mxu0 %v620_v38  ;;  %782 = vmatmul.mubr.f32.gmra.mrb[2].mxu1 %v624_v39 }
  0xd0   : > { %v674_v40 = vpop.permute.xlu1 %673  ;;  %v669_v41 = vpop.permute.xlu0 %668 }
  0xd4   : > { %v679_v48 = vpop.permute.xlu1 %678  ;;  %v684_v56 = vpop.permute.xlu0 %683 }
 0x19c   : > { %v765_v42 = vpop.f32.mrb[0].mxu0  ;;  %v777_v43 = vpop.f32.mrb[0].mxu1 }
 0x19d   : > { %v766_v44 = vadd.f32 %v765_v42, %v669_v41  ;;  %v767_v6 = vpop.f32.mrb[1].mxu0  ;;  %v779_v45 = vpop.f32.mrb[1].mxu1  ;;  %v778_v58 = vadd.f32 %v777_v43, %v679_v48 }
 0x19e   : > { %v768_v46 = vadd.f32 %v767_v6, %v669_v41  ;;  %v780_v59 = vadd.f32 %v779_v45, %v679_v48 }
 0x19f   : > { %v980_v47 = vmul.f32 -1.442695, %v766_v44  ;;  %v984_v62 = vmul.f32 -1.442695, %v778_v58 }
 0x1a0   : > { %v981_v49 = vmul.f32 -1.442695, %v768_v46  ;;  %v771_v50 = vpop.f32.mrb[2].mxu0  ;;  %v783_v51 = vpop.f32.mrb[2].mxu1  ;;  %v985_v63 = vmul.f32 -1.442695, %v780_v59 }
 0x1a1   : > { %1072 = vpow2.f32 %v980_v47  ;;  %v772_v7 = vadd.f32 %v771_v50, %v674_v40  ;;  %v773_v52 = vpop.f32.mrb[3].mxu0  ;;  %v785_v53 = vpop.f32.mrb[3].mxu1  ;;  %v784_v60 = vadd.f32 %v783_v51, %v684_v56 }
 0x1a2   : > { %1074 = vpow2.f32 %v981_v49  ;;  %v774_v54 = vadd.f32 %v773_v52, %v674_v40  ;;  %v786_v61 = vadd.f32 %v785_v53, %v684_v56 }
 0x1a3   : > { %v982_v55 = vmul.f32 -1.442695, %v772_v7 }
 0x1a4   : > { %v983_v57 = vmul.f32 -1.442695, %v774_v54 }
 0x1a5   : > { %1076 = vpow2.f32 %v982_v55 }
 0x1a6   : > { %1078 = vpow2.f32 %v983_v57 }
 0x1a7   : > { %1080 = vtanh.f32 %v784_v60 }
 0x1a8   : > { %1082 = vtanh.f32 %v786_v61 }
 0x1a9   : > { %1084 = vpow2.f32 %v984_v62 }
 0x1aa   : > { %1086 = vpow2.f32 %v985_v63 }
 0x1ab   : > { %v1073_v0 = vpop.eup %1072 }
 0x1ac   : > { %v1075_v1 = vpop.eup %1074  ;;  %v806_v2 = vadd.f32 1.0, %v1073_v0 }
 0x1ad   : > { %v807_v3 = vadd.f32 1.0, %v1075_v1 }
 0x1ae   : > { %1088 = vrcp.f32 %v806_v2 }
 0x1af   : > { %v1077_v4 = vpop.eup %1076  ;;  %1090 = vrcp.f32 %v807_v3 }
 0x1b0   : > { %v1079_v5 = vpop.eup %1078  ;;  %v808_v8 = vadd.f32 1.0, %v1077_v4 }
 0x1b1   : > { %v809_v9 = vadd.f32 1.0, %v1079_v5  ;;  %v1081_v10 = vpop.eup %1080 }
 0x1b2   : > { %1092 = vrcp.f32 %v808_v8  ;;  %v1083_v11 = vpop.eup %1082 }
 0x1b3   : > { %1094 = vrcp.f32 %v809_v9  ;;  %v1085_v12 = vpop.eup %1084 }
 0x1b4   : > { %v1087_v13 = vpop.eup %1086  ;;  %v810_v23 = vadd.f32 1.0, %v1085_v12 }
 0x1b5   : > { %v811_v25 = vadd.f32 1.0, %v1087_v13 }
 0x1b6   : > { %1096 = vrcp.f32 %v810_v23 }
 0x1b7   : > { %1098 = vrcp.f32 %v811_v25 }
 0x1b8   : > { %v1089_v14 = vpop.eup %1088 }
 0x1b9   : > { %v1091_v15 = vpop.eup %1090  ;;  %v830_v16 = vmul.f32 %v1089_v14, %v1081_v10 }
 0x1ba   : > { %v831_v19 = vmul.f32 %v1091_v15, %v1083_v11 }
 0x1bc   : > { %v1093_v24 = vpop.eup %1092 }
 0x1bd   : > { %v1095_v26 = vpop.eup %1094  ;;  %v828_v27 = vmul.f32 %v1093_v24, %v826_v17 }
 0x1be   : > { %v829_v28 = vmul.f32 %v1095_v26, %v827_v22 }
 0x1bf   : > { %v832_v29 = vadd.f32 %v830_v16, %v828_v27 }
 0x1c0   : > { %v833_v30 = vadd.f32 %v831_v19, %v829_v28  ;;  %v1097_v31 = vpop.eup %1096 }
 0x1c1   : > { %1100 = vtanh.f32 %v832_v29  ;;  %840 = vst [vmem:[%s331_s22] sm:$0xff] %v832_v29  ;;  %v1099_v32 = vpop.eup %1098 }
 0x1c2   : > { %1102 = vtanh.f32 %v833_v30  ;;  %841 = vst [vmem:[%s331_s22 + $0x8] sm:$0xff] %v833_v30 }
 0x1cb   : > { %v1101_v33 = vpop.eup %1100 }
 0x1cc   : > { %v1103_v34 = vpop.eup %1102  ;;  %v836_v35 = vmul.f32 %v1101_v33, %v1097_v31 }
 0x1cd   : > { %v837_v36 = vmul.f32 %v1103_v34, %v1099_v32 }
 0x1ce   : > { %838 = vst [vmem:[%s326_s27] sm:$0xff] %v836_v35 }
 0x1cf   : > { %839 = vst [vmem:[%s326_s27 + $0x8] sm:$0xff] %v837_v36 }
 0x1d0 PF: > { %s18_s24 = sadd.s32 1, %s1110_s24  }
 0x1d1   : > { %p15_p4 = scmp.ge.s32.totalorder %s18_s24, 4  }
 0x1d3   :  { %17 = sbr.rel (!%p15_p4) target bundleno = 1 (0x1), region = 99 }

</bundles_post_ra>
